<compile_context>
chip_gen: v7x
topology: tpu7x:2x2x1
jax: 0.10.0
libtpu: 0.0.40
codegen_flags: <defaults>
</compile_context>

<pallas_src>
import functools

import jax
import jax.numpy as jnp
from jax.experimental import pallas as pl
from jax.experimental.pallas import tpu as pltpu

SMOOTH = 1e-5


def _cdiv(a, b):
    return -(-a // b)


def _round_up(x, m):
    return _cdiv(x, m) * m


def _gdl_kernel(out_ref, tgt_ref, dice_ref, acc_t, acc_o, acc_ot,
                *, n_chunks, tile_s, s_total, smooth):
    """Accumulate per-row spatial sums, finalize per-row dice at the last step.

    out_ref / tgt_ref : (nc_tile, tile_s) tiles (original dtype; cast here)
    dice_ref          : (nc_tile, 1) f32 per-row generalized dice output
    acc_t/acc_o/acc_ot: (nc_tile, 128) f32 lane-wide VMEM accumulators
                        (flushed into once per grid step; hot loop uses vregs)
    """
    ks = pl.program_id(1)                 # spatial (reduction) axis -- last
    last = pl.num_programs(1) - 1

    @pl.when(ks == 0)
    def _():
        acc_t[...] = jnp.zeros_like(acc_t)
        acc_o[...] = jnp.zeros_like(acc_o)
        acc_ot[...] = jnp.zeros_like(acc_ot)

    def accumulate(valid_len):
        """Sum this step's 128-lane chunks in vregs; single VMEM flush."""
        shape = acc_t.shape
        loc_t = jnp.zeros(shape, jnp.float32)
        loc_o = jnp.zeros(shape, jnp.float32)
        loc_ot = jnp.zeros(shape, jnp.float32)
        for ci in range(n_chunks):
            lo = ci * 128
            if valid_len is not None and lo >= valid_len:
                break                      # fully-padded trailing chunks: skip
            o = out_ref[:, lo:lo + 128].astype(jnp.float32)
            t = tgt_ref[:, lo:lo + 128].astype(jnp.float32)
            if valid_len is not None and lo + 128 > valid_len:
                lane = jax.lax.broadcasted_iota(jnp.int32, shape, 1)
                keep = lane < (valid_len - lo)
                # select (not arithmetic mask): garbage NaN/Inf lanes must not
                # leak into the sums.
                o = jnp.where(keep, o, 0.0)
                t = jnp.where(keep, t, 0.0)
            loc_t = loc_t + t
            loc_o = loc_o + o
            loc_ot = loc_ot + o * t
        acc_t[...] += loc_t
        acc_o[...] += loc_o
        acc_ot[...] += loc_ot

    if s_total % tile_s == 0:
        accumulate(None)                   # no masking anywhere (hot path)
    else:
        rem = s_total % tile_s             # valid lanes in the last step

        @pl.when(ks < last)
        def _():
            accumulate(None)               # hot path: zero mask ops

        @pl.when(ks == last)
        def _():
            accumulate(rem)                # only trailing chunks masked

    @pl.when(ks == last)
    def _():
        # Single cross-lane (XLU) reduce per NC tile, epilogue only.
        ground_o = jnp.sum(acc_t[...], axis=-1, keepdims=True)    # sum(target)
        output_o = jnp.sum(acc_o[...], axis=-1, keepdims=True)    # sum(output)
        inter = jnp.sum(acc_ot[...], axis=-1, keepdims=True)      # sum(out*tgt)

        # Exact reciprocal: near-empty classes -> wei ~ 1e5+, keep precision.
        wei = 1.0 / (ground_o * ground_o + smooth)
        intersection = wei * inter
        union = wei * (ground_o + output_o)
        dice_ref[...] = 1.0 - 2.0 * intersection / (union + smooth)


def generalized_dice_loss(output, target, smooth=SMOOTH,
                          nc_tile_max=64, tile_spatial_max=8192):
    """output, target: (N, C, *spatial) arrays. Returns scalar f32 loss.

    Inputs may be f32 or bf16 (bf16 halves HBM traffic); `target` is expected
    to be one-hot 0/1 and `output` already activated (sigmoid/softmax).
    """
    n, c = output.shape[0], output.shape[1]
    s = 1
    for d in output.shape[2:]:
        s *= d
    nc = n * c

    # Reshape only -- no dtype upcast, no padding copies. The kernel casts
    # tiles to f32 on the fly and masks the partial last spatial tile.
    out_flat = output.reshape(nc, s)
    tgt_flat = target.reshape(nc, s)

    in_itemsize = out_flat.dtype.itemsize + tgt_flat.dtype.itemsize
    # Sublane granularity of the narrowest input dtype (packed sublane tile).
    sub = {4: 8, 2: 16, 1: 32}.get(min(out_flat.dtype.itemsize,
                                       tgt_flat.dtype.itemsize), 8)

    # NC tile: <= 64 so chunk operands + the vreg-resident accumulators fit
    # the 64-vreg file; prefer >= 2 NC tiles so the "parallel" axis can use
    # both TensorCores on v7x.
    if nc >= 2 * sub:
        nc_tile = min(nc_tile_max, _round_up(_cdiv(nc, 2), sub))
    else:
        nc_tile = min(nc_tile_max, _round_up(nc, sub))
    nc_tile = max(sub, nc_tile)
    nc_grid = _cdiv(nc, nc_tile)

    # Spatial tile: ~4 MiB of combined input per grid step (measured plateau
    # for HBM roofline), capped so the unrolled chunk loop and the
    # double-buffered VMEM footprint stay modest (<< v7x's 64 MiB/TC).
    target_step_bytes = 4 * 1024 * 1024
    tile_spatial = (target_step_bytes // (nc_tile * in_itemsize)) // 128 * 128
    tile_spatial = max(128, min(tile_spatial, tile_spatial_max))
    tile_spatial = min(tile_spatial, _round_up(s, 128))
    n_steps = _cdiv(s, tile_spatial)
    n_chunks = tile_spatial // 128

    # VMEM budget: double-buffered input tiles + f32 accumulators + output.
    vmem_need = (2 * nc_tile * tile_spatial * in_itemsize
                 + 3 * nc_tile * 128 * 4
                 + 2 * nc_tile * 4)
    vmem_limit = int(min(48 * 1024 * 1024,
                         max(16 * 1024 * 1024, 2 * vmem_need + (2 << 20))))

    kernel = functools.partial(
        _gdl_kernel,
        n_chunks=n_chunks,
        tile_s=tile_spatial,
        s_total=s,
        smooth=float(smooth),
    )

    cost = pl.CostEstimate(
        flops=4 * nc * s,
        transcendentals=0,
        bytes_accessed=nc * s * in_itemsize + nc_grid * nc_tile * 4,
    )

    # NOTE: if xprof still shows exposed input DMA on very large inputs, the
    # two in_specs can take pipeline_mode=pl.Buffered(3); the VMEM headroom at
    # these tile sizes allows it on every generation (incl. v7x's 64 MiB/TC).
    dice_rows = pl.pallas_call(
        kernel,
        out_shape=jax.ShapeDtypeStruct((nc_grid * nc_tile, 1), jnp.float32),
        grid_spec=pltpu.PrefetchScalarGridSpec(
            num_scalar_prefetch=0,
            grid=(nc_grid, n_steps),        # spatial/reduction axis last
            in_specs=[
                pl.BlockSpec((nc_tile, tile_spatial), lambda i, k: (i, k)),
                pl.BlockSpec((nc_tile, tile_spatial), lambda i, k: (i, k)),
            ],
            out_specs=pl.BlockSpec((nc_tile, 1), lambda i, k: (i, 0)),
            scratch_shapes=[pltpu.VMEM((nc_tile, 128), jnp.float32)] * 3,
        ),
        compiler_params=pltpu.CompilerParams(
            dimension_semantics=("parallel", "arbitrary"),
            vmem_limit_bytes=vmem_limit,
        ),
        cost_estimate=cost,
    )(out_flat, tgt_flat)

    # Padded NC rows (last NC tile) contain garbage dice values -- keep this
    # slice before the mean (matches torch.mean over the real (N, C) rows).
    return jnp.mean(dice_rows[:nc, 0])


def _reference_gdl(output, target, smooth=SMOOTH):
    """Plain-JAX reference mirroring the PyTorch forward exactly."""
    reduce_axis = tuple(range(2, output.ndim))
    wei = jnp.sum(target, axis=reduce_axis)
    wei = 1.0 / (wei ** 2 + smooth)
    ground_o = jnp.sum(target, axis=reduce_axis)
    output_o = jnp.sum(output, axis=reduce_axis)
    denominator = ground_o + output_o
    intersection = wei * jnp.sum(output * target, axis=reduce_axis)
    union = wei * denominator
    gldice = 1.0 - 2.0 * intersection / (union + smooth)
    return jnp.mean(gldice)


if __name__ == "__main__":
    key = jax.random.PRNGKey(0)

    def make_case(case_key, shape):
        n_, c_ = shape[0], shape[1]
        k_out, k_tgt = jax.random.split(case_key)
        out = jax.nn.sigmoid(jax.random.normal(k_out, shape, jnp.float32))
        labels = jax.random.randint(k_tgt, (n_,) + shape[2:], 0, c_)
        tgt = jnp.moveaxis(jax.nn.one_hot(labels, c_, dtype=jnp.float32), -1, 1)
        return out, tgt

    cases = [
        (2, 4, 16, 16),   # lane-aligned spatial, single NC tile
        (2, 4, 18, 18),   # partial last spatial chunk (masked epilogue step)
        (4, 8, 8, 8),     # nc_grid >= 2 ("parallel" NC tiles) + sub-128 tile
    ]
    keys = jax.random.split(key, len(cases))
    for case_key, shape in zip(keys, cases):
        output, target = make_case(case_key, shape)
        loss = jax.block_until_ready(generalized_dice_loss(output, target))
        ref = jax.block_until_ready(_reference_gdl(output, target))
        assert jnp.allclose(loss, ref, rtol=1e-5, atol=1e-6), (shape, loss, ref)

    print("KERNEL_OK")
</pallas_src>

<mosaic_0001>
module attributes {stable_mosaic.version = 11 : i64} {
  func.func @_gdl_kernel(%arg0: i32, %arg1: i32, %arg2: memref<8x256xf32, #tpu.memory_space<vmem>>, %arg3: memref<8x256xf32, #tpu.memory_space<vmem>>, %arg4: memref<8x1xf32, #tpu.memory_space<vmem>>, %arg5: memref<8x128xf32, #tpu.memory_space<vmem>>, %arg6: memref<8x128xf32, #tpu.memory_space<vmem>>, %arg7: memref<8x128xf32, #tpu.memory_space<vmem>>) attributes {dimension_semantics = [#tpu.dimension_semantics<parallel>, #tpu.dimension_semantics<arbitrary>], iteration_bounds = array<i64: 1, 1>, scalar_prefetch = 0 : i64, scratch_operands = 3 : i64, tpu.core_type = #tpu.core_type<tc>, window_params = [{transform_indices = @transform_0, window_bounds = array<i64: 8, 256>}, {transform_indices = @transform_1, window_bounds = array<i64: 8, 256>}, {transform_indices = @transform_2, window_bounds = array<i64: 8, 1>}]} {
    %c0_i32 = arith.constant 0 : i32
    %0 = arith.cmpi eq, %arg1, %c0_i32 : i32
    %1 = arith.extui %0 : i1 to i32
    %c0_i32_0 = arith.constant 0 : i32
    %2 = arith.cmpi ne, %1, %c0_i32_0 : i32
    scf.if %2 {
      %cst_23 = arith.constant 0.000000e+00 : f32
      %30 = vector.broadcast %cst_23 : f32 to vector<8x128xf32>
      %c0_24 = arith.constant 0 : index
      %c0_25 = arith.constant 0 : index
      %31 = vector.load %arg5[%c0_24, %c0_25] : memref<8x128xf32, #tpu.memory_space<vmem>>, vector<8x128xf32>
      tpu.vector_store %arg5[%c0_24, %c0_25], %30 {strides = array<i32>} : memref<8x128xf32, #tpu.memory_space<vmem>>, vector<8x128xf32>,
      %cst_26 = arith.constant 0.000000e+00 : f32
      %32 = vector.broadcast %cst_26 : f32 to vector<8x128xf32>
      %c0_27 = arith.constant 0 : index
      %c0_28 = arith.constant 0 : index
      %33 = vector.load %arg6[%c0_27, %c0_28] : memref<8x128xf32, #tpu.memory_space<vmem>>, vector<8x128xf32>
      tpu.vector_store %arg6[%c0_27, %c0_28], %32 {strides = array<i32>} : memref<8x128xf32, #tpu.memory_space<vmem>>, vector<8x128xf32>,
      %cst_29 = arith.constant 0.000000e+00 : f32
      %34 = vector.broadcast %cst_29 : f32 to vector<8x128xf32>
      %c0_30 = arith.constant 0 : index
      %c0_31 = arith.constant 0 : index
      %35 = vector.load %arg7[%c0_30, %c0_31] : memref<8x128xf32, #tpu.memory_space<vmem>>, vector<8x128xf32>
      tpu.vector_store %arg7[%c0_30, %c0_31], %34 {strides = array<i32>} : memref<8x128xf32, #tpu.memory_space<vmem>>, vector<8x128xf32>,
    } else {
    }
    %cst = arith.constant 0.000000e+00 : f32
    %3 = vector.broadcast %cst : f32 to vector<8x128xf32>
    %cst_1 = arith.constant 0.000000e+00 : f32
    %4 = vector.broadcast %cst_1 : f32 to vector<8x128xf32>
    %cst_2 = arith.constant 0.000000e+00 : f32
    %5 = vector.broadcast %cst_2 : f32 to vector<8x128xf32>
    %c0 = arith.constant 0 : index
    %c0_3 = arith.constant 0 : index
    %6 = vector.load %arg2[%c0, %c0_3] : memref<8x256xf32, #tpu.memory_space<vmem>>, vector<8x128xf32>
    %c0_4 = arith.constant 0 : index
    %c0_5 = arith.constant 0 : index
    %7 = vector.load %arg3[%c0_4, %c0_5] : memref<8x256xf32, #tpu.memory_space<vmem>>, vector<8x128xf32>
    %8 = arith.addf %3, %7 : vector<8x128xf32>
    %9 = arith.addf %4, %6 : vector<8x128xf32>
    %10 = arith.mulf %6, %7 : vector<8x128xf32>
    %11 = arith.addf %5, %10 : vector<8x128xf32>
    %c0_6 = arith.constant 0 : index
    %c128 = arith.constant 128 : index
    %12 = vector.load %arg2[%c0_6, %c128] : memref<8x256xf32, #tpu.memory_space<vmem>>, vector<8x128xf32>
    %c0_7 = arith.constant 0 : index
    %c128_8 = arith.constant 128 : index
    %13 = vector.load %arg3[%c0_7, %c128_8] : memref<8x256xf32, #tpu.memory_space<vmem>>, vector<8x128xf32>
    %14 = arith.addf %8, %13 : vector<8x128xf32>
    %15 = arith.addf %9, %12 : vector<8x128xf32>
    %16 = arith.mulf %12, %13 : vector<8x128xf32>
    %17 = arith.addf %11, %16 : vector<8x128xf32>
    %c0_9 = arith.constant 0 : index
    %c0_10 = arith.constant 0 : index
    %18 = vector.load %arg5[%c0_9, %c0_10] : memref<8x128xf32, #tpu.memory_space<vmem>>, vector<8x128xf32>
    %19 = arith.addf %18, %14 : vector<8x128xf32>
    %c0_11 = arith.constant 0 : index
    %c0_12 = arith.constant 0 : index
    %20 = vector.load %arg5[%c0_11, %c0_12] : memref<8x128xf32, #tpu.memory_space<vmem>>, vector<8x128xf32>
    tpu.vector_store %arg5[%c0_11, %c0_12], %19 {strides = array<i32>} : memref<8x128xf32, #tpu.memory_space<vmem>>, vector<8x128xf32>,
    %c0_13 = arith.constant 0 : index
    %c0_14 = arith.constant 0 : index
    %21 = vector.load %arg6[%c0_13, %c0_14] : memref<8x128xf32, #tpu.memory_space<vmem>>, vector<8x128xf32>
    %22 = arith.addf %21, %15 : vector<8x128xf32>
    %c0_15 = arith.constant 0 : index
    %c0_16 = arith.constant 0 : index
    %23 = vector.load %arg6[%c0_15, %c0_16] : memref<8x128xf32, #tpu.memory_space<vmem>>, vector<8x128xf32>
    tpu.vector_store %arg6[%c0_15, %c0_16], %22 {strides = array<i32>} : memref<8x128xf32, #tpu.memory_space<vmem>>, vector<8x128xf32>,
    %c0_17 = arith.constant 0 : index
    %c0_18 = arith.constant 0 : index
    %24 = vector.load %arg7[%c0_17, %c0_18] : memref<8x128xf32, #tpu.memory_space<vmem>>, vector<8x128xf32>
    %25 = arith.addf %24, %17 : vector<8x128xf32>
    %c0_19 = arith.constant 0 : index
    %c0_20 = arith.constant 0 : index
    %26 = vector.load %arg7[%c0_19, %c0_20] : memref<8x128xf32, #tpu.memory_space<vmem>>, vector<8x128xf32>
    tpu.vector_store %arg7[%c0_19, %c0_20], %25 {strides = array<i32>} : memref<8x128xf32, #tpu.memory_space<vmem>>, vector<8x128xf32>,
    %c0_i32_21 = arith.constant 0 : i32
    %27 = arith.cmpi eq, %arg1, %c0_i32_21 : i32
    %28 = arith.extui %27 : i1 to i32
    %c0_i32_22 = arith.constant 0 : i32
    %29 = arith.cmpi ne, %28, %c0_i32_22 : i32
    scf.if %29 {
      %c0_23 = arith.constant 0 : index
      %c0_24 = arith.constant 0 : index
      %30 = vector.load %arg5[%c0_23, %c0_24] : memref<8x128xf32, #tpu.memory_space<vmem>>, vector<8x128xf32>
      %cst_25 = arith.constant dense<0.000000e+00> : vector<8xf32>
      %31 = vector.multi_reduction <add>, %30, %cst_25 [1] : vector<8x128xf32> to vector<8xf32>
      %32 = vector.shape_cast %31 : vector<8xf32> to vector<8x1xf32>
      %c0_26 = arith.constant 0 : index
      %c0_27 = arith.constant 0 : index
      %33 = vector.load %arg6[%c0_26, %c0_27] : memref<8x128xf32, #tpu.memory_space<vmem>>, vector<8x128xf32>
      %cst_28 = arith.constant dense<0.000000e+00> : vector<8xf32>
      %34 = vector.multi_reduction <add>, %33, %cst_28 [1] : vector<8x128xf32> to vector<8xf32>
      %35 = vector.shape_cast %34 : vector<8xf32> to vector<8x1xf32>
      %c0_29 = arith.constant 0 : index
      %c0_30 = arith.constant 0 : index
      %36 = vector.load %arg7[%c0_29, %c0_30] : memref<8x128xf32, #tpu.memory_space<vmem>>, vector<8x128xf32>
      %cst_31 = arith.constant dense<0.000000e+00> : vector<8xf32>
      %37 = vector.multi_reduction <add>, %36, %cst_31 [1] : vector<8x128xf32> to vector<8xf32>
      %38 = vector.shape_cast %37 : vector<8xf32> to vector<8x1xf32>
      %39 = arith.mulf %32, %32 : vector<8x1xf32>
      %cst_32 = arith.constant 9.99999974E-6 : f32
      %40 = vector.broadcast %cst_32 : f32 to vector<8x1xf32>
      %41 = arith.addf %39, %40 : vector<8x1xf32>
      %cst_33 = arith.constant 1.000000e+00 : f32
      %42 = vector.broadcast %cst_33 : f32 to vector<8x1xf32>
      %43 = arith.divf %42, %41 : vector<8x1xf32>
      %44 = arith.mulf %43, %38 : vector<8x1xf32>
      %45 = arith.addf %32, %35 : vector<8x1xf32>
      %46 = arith.mulf %43, %45 : vector<8x1xf32>
      %cst_34 = arith.constant 2.000000e+00 : f32
      %47 = vector.broadcast %cst_34 : f32 to vector<8x1xf32>
      %48 = arith.mulf %47, %44 : vector<8x1xf32>
      %cst_35 = arith.constant 9.99999974E-6 : f32
      %49 = vector.broadcast %cst_35 : f32 to vector<8x1xf32>
      %50 = arith.addf %46, %49 : vector<8x1xf32>
      %51 = arith.divf %48, %50 : vector<8x1xf32>
      %cst_36 = arith.constant 1.000000e+00 : f32
      %52 = vector.broadcast %cst_36 : f32 to vector<8x1xf32>
      %53 = arith.subf %52, %51 : vector<8x1xf32>
      %c0_37 = arith.constant 0 : index
      %c0_38 = arith.constant 0 : index
      %54 = vector.load %arg4[%c0_37, %c0_38] : memref<8x1xf32, #tpu.memory_space<vmem>>, vector<8x1xf32>
      tpu.vector_store %arg4[%c0_37, %c0_38], %53 {strides = array<i32>} : memref<8x1xf32, #tpu.memory_space<vmem>>, vector<8x1xf32>,
    } else {
    }
    return
  }
  func.func @transform_0(%arg0: i32, %arg1: i32) -> (i32, i32) {
    %c0_i32 = arith.constant 0 : i32
    return %arg0, %arg1 : i32, i32
  }
  func.func @transform_1(%arg0: i32, %arg1: i32) -> (i32, i32) {
    %c0_i32 = arith.constant 0 : i32
    return %arg0, %arg1 : i32, i32
  }
  func.func @transform_2(%arg0: i32, %arg1: i32) -> (i32, i32) {
    %c0_i32 = arith.constant 0 : i32
    %c0_i32_0 = arith.constant 0 : i32
    return %arg0, %c0_i32 : i32, i32
  }
}

</mosaic_0001>

<bundles_post_ra>
// kernel: tpu_custom_call.1
= control target key start
LH: loop header
LB: loop body
LE: loop exit
PB: predicated region body
PF: predicated region fallthrough
CT: control target
= control target key end

     0   :  { %7 = vsyncpa [#allocation6], 0  ;;  %s193_s0 = inlined_call_operand.hbm [shape: f32[8,256], index: 0, kind: input, shape index: {}]   ;;  %s194_s1 = inlined_call_operand.hbm [shape: f32[8,256], index: 1, kind: input, shape index: {}]   ;;  %s195_s2 = inlined_call_operand.vmem [shape: f32[8,1], index: 2, kind: output, shape index: {}]  }
   0x1   :  { %8 = vsyncpa [#allocation8], 0  ;;  %s149_s9 = smov [#allocation5]   ;;  %s150_s11 = smov [#allocation7]  }
   0x2   :  { %s15_s10 = sshll.u32 %s149_s9, 4  ;;  %s25_s12 = sshll.u32 %s150_s11, 4  ;;  %s16_s10 = int_to_ptr.vmem [resolvable:$true] %s15_s10  ;;  %s26_s12 = int_to_ptr.vmem [resolvable:$true] %s25_s12 }
   0x3   :  { %s101_s15 = scalar_lea.hbm %s193_s0, 256 }
   0x4   :  { %p102_p0 = scmp.ne.s32.totalorder %s193_s0, %s101_s15  ;;  %p105_p1 = scmp.lt.u32.totalorder %s101_s15, %s193_s0 }
   0x6   :  { %p107_p2 = pnand %p105_p1, %p102_p0 }
   0x8   :  { %110 = shalt.err (!%p107_p2)
}
   0x9   :  { %s111_s20 = scalar_lea.vmem %s16_s10, 256  ;;  %p116_p4 = scmp.lt.s32.totalorder %s16_s10, %s16_s10 }
   0xa   :  { %p112_p3 = scmp.ne.s32.totalorder %s16_s10, %s111_s20  ;;  %p117_p5 = scmp.lt.s32.totalorder %s111_s20, %s111_s20 }
   0xc   :  { %p118_p6 = por %p117_p5, %p116_p4 }
   0xe   :  { %p119_p7 = pnand %p118_p6, %p112_p3 }
  0x10   :  { %122 = shalt.err (!%p119_p7)
}
  0x11   :  { %18 = dma.hbm_to_vmem [thread:$0]  %s193_s0, 256, %s16_s10, [#allocation6]  }
  0x12   :  { %s123_s25 = scalar_lea.hbm %s194_s1, 256 }
  0x13   :  { %p124_p8 = scmp.ne.s32.totalorder %s194_s1, %s123_s25  ;;  %p127_p9 = scmp.lt.u32.totalorder %s123_s25, %s194_s1 }
  0x15   :  { %p129_p10 = pnand %p127_p9, %p124_p8 }
  0x17   :  { %132 = shalt.err (!%p129_p10)
}
  0x18   :  { %s133_s30 = scalar_lea.vmem %s26_s12, 256  ;;  %p138_p12 = scmp.lt.s32.totalorder %s26_s12, %s26_s12 }
  0x19   :  { %p134_p11 = scmp.ne.s32.totalorder %s26_s12, %s133_s30  ;;  %p139_p13 = scmp.lt.s32.totalorder %s133_s30, %s133_s30 }
  0x1b   :  { %p140_p0 = por %p139_p13, %p138_p12 }
  0x1d   :  { %p141_p1 = pnand %p140_p0, %p134_p11 }
  0x1f   :  { %144 = shalt.err (!%p141_p1)
}
  0x20   :  { %28 = dma.hbm_to_vmem [thread:$0]  %s194_s1, 256, %s26_s12, [#allocation8]  }
  0x21   :  { %145 = dma.done.wait [#allocation6], 256  }
  0x22   :  { %146 = vsyncadd [#allocation6], 4294967040 }
  0x23   :  { %147 = dma.done.wait [#allocation8], 256  }
  0x24   :  { %148 = vsyncadd [#allocation8], 4294967040  ;;  %v43_v0 = vld [vmem:[#allocation7] sm:$0xff]  ;;  %v49_v1 = vld [vmem:[#allocation7 + $0x8] sm:$0xff]  ;;  %vm87_vm0 = vcmask 7168  }
  0x25   :  { %v42_v2 = vld [vmem:[#allocation5] sm:$0xff]  ;;  %v50_v3 = vadd.f32 %v49_v1, %v43_v0  ;;  %v48_v4 = vld [vmem:[#allocation5 + $0x8] sm:$0xff] }
  0x26   :  { %v46_v5 = vmul.f32 %v43_v0, %v42_v2  ;;  %v52_v6 = vmul.f32 %v49_v1, %v48_v4  ;;  %v51_v7 = vadd.f32 %v48_v4, %v42_v2 }
  0x27   :  { %67 = vadd.xlane.f32.xlu0 %v50_v3 }
  0x28   :  { %v53_v8 = vadd.f32 %v52_v6, %v46_v5 }
  0x2a   :  { %73 = vadd.xlane.f32.xlu1 %v53_v8 }
  0x2b   :  { %70 = vadd.xlane.f32.xlu0 %v51_v7 }
  0xb4   :  { %v68_v9 = vpop.xlane.xlu0 %67 }
  0xb5   :  { %v75_v10 = vmul.f32 %v68_v9, %v68_v9 }
  0xb7   :  { %v76_v11 = vadd.f32 1e-05, %v75_v10  ;;  %v74_v17 = vpop.xlane.xlu1 %73 }
  0xb8   :  { %v71_v12 = vpop.xlane.xlu0 %70 }
  0xb9   :  { %97 = vrcp.f32 %v76_v11  ;;  %v80_v13 = vadd.f32 %v71_v12, %v68_v9 }
  0xc3   :  { %v98_v14 = vpop.eup %97 }
  0xc4   :  { %v81_v15 = vmul.f32 %v98_v14, %v80_v13  ;;  %v79_v18 = vmul.f32 %v98_v14, %v74_v17 }
  0xc6   :  { %v83_v16 = vadd.f32 1e-05, %v81_v15  ;;  %v82_v19 = vmul.f32 2.0, %v79_v18 }
  0xc8   :  { %99 = vrcp.f32 %v83_v16 }
  0xd2   :  { %v100_v20 = vpop.eup %99 }
  0xd3   :  { %v85_v21 = vmul.f32 %v100_v20, %v82_v19 }
  0xd5   :  { %v86_v22 = vsub.f32 1.0, %v85_v21 }
  0xd7   :  { %88 = vst.msk [vmem:[%s195_s2] sm:$0xff] %vm87_vm0, %v86_v22 }
  0xd8   :  { %93 = vsyncpa [#allocation6], 1 }
  0xd9   :  { %94 = vsyncpa [#allocation8], 1 }

</bundles_post_ra>
